<compile_context>
chip_gen: v6e
topology: v6e:2x2x1
jax: 0.10.0
libtpu: 0.0.40
codegen_flags: <defaults>
</compile_context>

<pallas_src>
import functools

import jax
import jax.numpy as jnp
from jax.experimental import pallas as pl
from jax.experimental.pallas import tpu as pltpu


def _round_up(x: int, m: int) -> int:
    return ((x + m - 1) // m) * m


def _pooling_kernel(x_ref, w_ref, b_ref, o_ref):
    # x_ref: [TM, Hp] (native dtype)     -- cast to bf16 for the MXU
    # w_ref: [Hp, TN] (bf16, pre-transposed [H_in, H_out] slab)
    # b_ref: [1, TN]  (f32)
    # o_ref: [TM, TN]
    y = jnp.dot(
        x_ref[...].astype(jnp.bfloat16),
        w_ref[...],
        preferred_element_type=jnp.float32,
    )
    y = y + b_ref[...].astype(jnp.float32)
    o_ref[...] = jnp.tanh(y).astype(o_ref.dtype)


@functools.partial(jax.jit, static_argnames=("tm", "tn"))
def _pooler_call(x, w_p, b_p, *, tm, tn):
    orig_shape = x.shape
    h = orig_shape[-1]
    h_pad = w_p.shape[0]
    x2d = x.reshape(-1, h)
    m = x2d.shape[0]

    # Pad the hidden dim only when it is not already lane-aligned.
    if h_pad != h:
        x2d = jnp.pad(x2d, ((0, 0), (0, h_pad - h)))

    # dtype-aware sublane rounding for the row tile; no M padding.
    sub = {4: 8, 2: 16, 1: 32}.get(jnp.dtype(x.dtype).itemsize, 8)
    tm_eff = _round_up(min(tm, _round_up(m, sub)), sub)

    grid = (pl.cdiv(m, tm_eff), pl.cdiv(h_pad, tn))

    out_dtype = x.dtype
    cost = pl.CostEstimate(
        flops=2 * m * h_pad * h_pad,
        transcendentals=m * h_pad,
        bytes_accessed=(
            x2d.size * x2d.dtype.itemsize
            + w_p.size * w_p.dtype.itemsize
            + b_p.size * b_p.dtype.itemsize
            + m * h_pad * jnp.dtype(out_dtype).itemsize
        ),
    )

    out = pl.pallas_call(
        _pooling_kernel,
        out_shape=jax.ShapeDtypeStruct((m, h_pad), out_dtype),
        grid_spec=pltpu.PrefetchScalarGridSpec(
            num_scalar_prefetch=0,
            grid=grid,
            in_specs=[
                pl.BlockSpec((tm_eff, h_pad), lambda i, j: (i, 0)),  # x rows
                pl.BlockSpec((h_pad, tn), lambda i, j: (0, j)),      # weight cols
                pl.BlockSpec((1, tn), lambda i, j: (0, j)),          # bias cols
            ],
            out_specs=pl.BlockSpec((tm_eff, tn), lambda i, j: (i, j)),
        ),
        compiler_params=pltpu.CompilerParams(
            dimension_semantics=("parallel", "parallel"),
            vmem_limit_bytes=64 * 1024 * 1024,
        ),
        cost_estimate=cost,
    )(x2d, w_p, b_p)

    if h_pad != h:
        out = out[:, :h]
    return out.reshape(orig_shape)


def make_bert_pooler(weight, bias, *, tm=512, tn=None):
    """Build the BertPoolingLayer forward (eval dropout -> dense -> tanh).

    weight: [H_out, H_in] (PyTorch nn.Linear layout); bias: [H_out].
    One-time prep (transpose / pad / bf16 cast) happens here, outside the
    per-call jitted path.
    """
    h_out, h_in = weight.shape
    assert h_out == h_in, "BertPoolingLayer dense is square (hidden -> hidden)"
    h = h_in
    h_pad = max(128, _round_up(h, 128))

    # y = x @ W.T + b  ->  pre-transpose once to [H_in, H_out], pad, cast bf16.
    w_p = jnp.pad(
        jnp.asarray(weight).T, ((0, h_pad - h), (0, h_pad - h))
    ).astype(jnp.bfloat16)
    b_p = jnp.pad(jnp.asarray(bias, dtype=jnp.float32), (0, h_pad - h)).reshape(
        1, h_pad
    )

    if tn is None:
        # Keep the whole bf16 weight VMEM-resident when small; tile output
        # columns lane-densely (>=128 wide) for large H to cap VMEM (v7x 64 MiB).
        tn = h_pad if h_pad <= 2048 else 1024

    return functools.partial(_pooler_call, w_p=w_p, b_p=b_p, tm=tm, tn=tn)


def bert_pooling_layer(x, weight, bias, *, tm=512, tn=None):
    """Convenience one-shot call (prep + apply)."""
    return make_bert_pooler(weight, bias, tm=tm, tn=tn)(x)


if __name__ == "__main__":
    # Small config: batch=2, seq=8, hidden=32
    B, S, H = 2, 8, 32

    key = jax.random.PRNGKey(0)
    kx, kw, kb = jax.random.split(key, 3)

    x = jax.random.normal(kx, (B, S, H), dtype=jnp.float32)
    # Deterministic synthetic parameters (not a checkpoint load).
    weight = jax.random.normal(kw, (H, H), dtype=jnp.float32) * 0.02
    bias = jax.random.normal(kb, (H,), dtype=jnp.float32) * 0.02

    pooler = make_bert_pooler(weight, bias)
    y = jax.block_until_ready(pooler(x))

    # Reference check in plain JAX (dropout = identity in eval mode).
    # bf16 MXU operands with f32 accumulation -> slightly loosened tolerance.
    y_ref = jnp.tanh(x @ weight.T + bias)
    assert y.shape == y_ref.shape
    assert jnp.allclose(y, y_ref, atol=2e-2, rtol=2e-2), "mismatch vs reference"

    print("KERNEL_OK")
</pallas_src>

<mosaic_0001>
module attributes {stable_mosaic.version = 11 : i64} {
  func.func @_pooling_kernel(%arg0: i32, %arg1: i32, %arg2: memref<16x128xf32, #tpu.memory_space<vmem>>, %arg3: memref<128x128xbf16, #tpu.memory_space<vmem>>, %arg4: memref<1x128xf32, #tpu.memory_space<vmem>>, %arg5: memref<16x128xf32, #tpu.memory_space<vmem>>) attributes {dimension_semantics = [#tpu.dimension_semantics<parallel>, #tpu.dimension_semantics<parallel>], iteration_bounds = array<i64: 1, 1>, scalar_prefetch = 0 : i64, scratch_operands = 0 : i64, tpu.core_type = #tpu.core_type<tc>, window_params = [{transform_indices = @transform_0, window_bounds = array<i64: 16, 128>}, {transform_indices = @transform_1, window_bounds = array<i64: 128, 128>}, {transform_indices = @transform_2, window_bounds = array<i64: 1, 128>}, {transform_indices = @transform_3, window_bounds = array<i64: 16, 128>}]} {
    %c0 = arith.constant 0 : index
    %c0_0 = arith.constant 0 : index
    %0 = vector.load %arg2[%c0, %c0_0] : memref<16x128xf32, #tpu.memory_space<vmem>>, vector<16x128xf32>
    %1 = arith.truncf %0 : vector<16x128xf32> to vector<16x128xbf16>
    %c0_1 = arith.constant 0 : index
    %c0_2 = arith.constant 0 : index
    %2 = vector.load %arg3[%c0_1, %c0_2] : memref<128x128xbf16, #tpu.memory_space<vmem>>, vector<128x128xbf16>
    %cst = arith.constant dense<0.000000e+00> : vector<16x128xf32>
    %3 = tpu.matmul %1, %2, %cst {dimension_numbers = #tpu.dot_dimension_numbers<[1], [0], [0], [1], [0, 0, 1, 1], [], []>} : vector<16x128xbf16>, vector<128x128xbf16>, vector<16x128xf32> -> vector<16x128xf32>
    %c0_3 = arith.constant 0 : index
    %c0_4 = arith.constant 0 : index
    %4 = vector.load %arg4[%c0_3, %c0_4] : memref<1x128xf32, #tpu.memory_space<vmem>>, vector<1x128xf32>
    %5 = vector.broadcast %4 : vector<1x128xf32> to vector<16x128xf32>
    %6 = arith.addf %3, %5 : vector<16x128xf32>
    %7 = math.tanh %6 : vector<16x128xf32>
    %c0_5 = arith.constant 0 : index
    %c0_6 = arith.constant 0 : index
    %8 = vector.load %arg5[%c0_5, %c0_6] : memref<16x128xf32, #tpu.memory_space<vmem>>, vector<16x128xf32>
    tpu.vector_store %arg5[%c0_5, %c0_6], %7 {strides = array<i32>} : memref<16x128xf32, #tpu.memory_space<vmem>>, vector<16x128xf32>,
    return
  }
  func.func @transform_0(%arg0: i32, %arg1: i32) -> (i32, i32) {
    %c0_i32 = arith.constant 0 : i32
    %c0_i32_0 = arith.constant 0 : i32
    return %arg0, %c0_i32 : i32, i32
  }
  func.func @transform_1(%arg0: i32, %arg1: i32) -> (i32, i32) {
    %c0_i32 = arith.constant 0 : i32
    %c0_i32_0 = arith.constant 0 : i32
    return %c0_i32, %arg1 : i32, i32
  }
  func.func @transform_2(%arg0: i32, %arg1: i32) -> (i32, i32) {
    %c0_i32 = arith.constant 0 : i32
    %c0_i32_0 = arith.constant 0 : i32
    return %c0_i32, %arg1 : i32, i32
  }
  func.func @transform_3(%arg0: i32, %arg1: i32) -> (i32, i32) {
    %c0_i32 = arith.constant 0 : i32
    return %arg0, %arg1 : i32, i32
  }
}

</mosaic_0001>

<bundles_post_ra>
// kernel: _pooler_call.1
= control target key start
LH: loop header
LB: loop body
LE: loop exit
PB: predicated region body
PF: predicated region fallthrough
CT: control target
= control target key end

     0   :  { %8 = vsyncpa [#allocation3], 0  ;;  %s230_s12 = smov [#allocation2]   ;;  %s273_s0 = inlined_call_operand.vmem [shape: f32[16,128], index: 0, kind: input, shape index: {}]   ;;  %s274_s1 = inlined_call_operand.hbm [shape: bf16[128,128], index: 1, kind: input, shape index: {}]   ;;  %s275_s2 = inlined_call_operand.vmem [shape: f32[1,128], index: 2, kind: input, shape index: {}]   ;;  %s276_s3 = inlined_call_operand.vmem [shape: f32[16,128], index: 3, kind: output, shape index: {}]  }
   0x1   :  { %s16_s13 = sshll.u32 %s230_s12, 4  ;;  %s17_s13 = int_to_ptr.vmem [resolvable:$true] %s16_s13 }
   0x2   :  { %s216_s14 = scalar_lea.vmem %s17_s13, 1024  ;;  %p221_p1 = scmp.lt.s32.totalorder %s17_s13, %s17_s13 }
   0x3   :  { %p217_p0 = scmp.ne.s32.totalorder %s17_s13, %s216_s14  ;;  %p222_p2 = scmp.lt.s32.totalorder %s216_s14, %s216_s14 }
   0x5   :  { %p223_p3 = por %p222_p2, %p221_p1 }
   0x7   :  { %p224_p4 = pnand %p223_p3, %p217_p0 }
   0x9   :  { %227 = shalt.err (!%p224_p4)
}
   0xa   :  { %s231_s15 = smov 64   ;;  %s232_s16 = smov 4  }
   0xb   :  { %22 = dma.hbm_to_vmem [thread:$0]  %s274_s1, 1024, %s17_s13, [#allocation3], %s231_s15, %s231_s15, %s232_s16  }
   0xc   :  { %228 = dma.done.wait [#allocation3], 1024  }
   0xd   :  { %229 = vsyncadd [#allocation3], 4294966272  ;;  %v233_v0 = vmov 0.0   ;;  %vm234_vm0 = vmmov 0   ;;  %v196_v1 = vld [vmem:[#allocation2 + $0x38] sm:$0xff]   ;;  %v197_v2 = vld [vmem:[#allocation2 + $0x30] sm:$0xff]  }
   0xe   :  { %171 = vmatprep.subr.bf16.mxu0 %v233_v0  ;;  %187 = vmatprep.mubr.msk.bf16.mxu0 %vm234_vm0, %v233_v0  ;;  %v198_v3 = vld [vmem:[#allocation2 + $0x28] sm:$0xff]   ;;  %v199_v4 = vld [vmem:[#allocation2 + $0x20] sm:$0xff]   ;;  %v200_v5 = vld [vmem:[#allocation2 + $0x18] sm:$0xff]  }
   0xf   :  { %172 = vmatpush3.bf16.msra.mxu0 %v196_v1  ;;  %v201_v6 = vld [vmem:[#allocation2 + $0x10] sm:$0xff]   ;;  %v202_v7 = vld [vmem:[#allocation2 + $0x8] sm:$0xff]   ;;  %v203_v8 = vld [vmem:[#allocation2] sm:$0xff]  }
  0x10   :  { %173 = vmatprep.subr.bf16.mxu0 %v233_v0  ;;  %v29_v9 = vld [vmem:[%s273_s0] sm:$0xff]  ;;  %v30_v10 = vld [vmem:[%s273_s0 + $0x8] sm:$0xff] }
  0x11   :  { %v31_v11 = vpack.c.bf16 %v30_v10, %v29_v9  ;;  %v153_v12 = vld [vmem:[%s275_s2] ss:$0 sm:$0xff] }
  0x13   :  { %174 = vmatpush3.bf16.msra.mxu0 %v197_v2 }
  0x14   :  { %175 = vmatprep.subr.bf16.mxu0 %v233_v0 }
  0x17   :  { %176 = vmatpush3.bf16.msra.mxu0 %v198_v3 }
  0x18   :  { %177 = vmatprep.subr.bf16.mxu0 %v233_v0 }
  0x1b   :  { %178 = vmatpush3.bf16.msra.mxu0 %v199_v4 }
  0x1c   :  { %179 = vmatprep.subr.bf16.mxu0 %v233_v0 }
  0x1f   :  { %180 = vmatpush3.bf16.msra.mxu0 %v200_v5 }
  0x20   :  { %181 = vmatprep.subr.bf16.mxu0 %v233_v0 }
  0x23   :  { %182 = vmatpush3.bf16.msra.mxu0 %v201_v6 }
  0x24   :  { %183 = vmatprep.subr.bf16.mxu0 %v233_v0 }
  0x27   :  { %184 = vmatpush3.bf16.msra.mxu0 %v202_v7 }
  0x28   :  { %185 = vmatprep.subr.bf16.mxu0 %v233_v0 }
  0x2b   :  { %186 = vmatpush3.bf16.msra.mxu0 %v203_v8 }
  0x2e   :  { %188 = vmatmul.mubr.bf16.vlgmr.msra.gmra.mxu0 %v31_v11 }
  0xee   :  { %v137_v13 = vpop.f32.mrf.mxu0 }
  0xef   :  { %v138_v14 = vadd.f32 %v153_v12, %v137_v13 }
  0xf0   :  { %v189_v15 = vpop.f32.mrf.mxu0 }
  0xf1   :  { %204 = vtanh.f32 %v138_v14 }
  0xf2   :  { %v140_v16 = vpop.f32.mrf.mxu0 }
  0xf3   :  { %v141_v17 = vadd.f32 %v153_v12, %v140_v16 }
  0xf4   :  { %v190_v18 = vpop.f32.mrf.mxu0 }
  0xf5   :  { %206 = vtanh.f32 %v141_v17 }
  0xfe   :  { %v205_v19 = vpop.eup %204 }
  0xff   :  { %146 = vst [vmem:[%s276_s3] sm:$0xff] %v205_v19 }
 0x102   :  { %v207_v20 = vpop.eup %206 }
 0x103   :  { %147 = vst [vmem:[%s276_s3 + $0x8] sm:$0xff] %v207_v20 }
 0x104   :  { %152 = vsyncpa [#allocation3], 1 }

</bundles_post_ra>
